<compile_context>
chip_gen: v7x
topology: tpu7x:2x2x1
jax: 0.10.0
libtpu: 0.0.40
codegen_flags: <defaults>
</compile_context>

<pallas_src>
import jax
import jax.numpy as jnp
from jax import lax
from jax.experimental import pallas as pl
from jax.experimental.pallas import tpu as pltpu


LANES = 128
SUBLANES = 8


def _make_bce_kernel(row_tile, inner, rows, need_mask):
    """rows = number of (possibly lane-padded) rows actually present in HBM."""
    reduce_rows = (row_tile % SUBLANES == 0)

    def _loss(true_ref, pred_ref, score_ref):
        x = pred_ref[...].astype(jnp.float32)
        y = true_ref[...].astype(jnp.float32)
        w = score_ref[...].astype(jnp.float32)
        # numerically stable BCE with logits, weighted elementwise:
        #   w * (max(x, 0) - x*y + log1p(exp(-|x|)))
        return w * (jnp.maximum(x, 0.0) - x * y + jnp.log1p(jnp.exp(-jnp.abs(x))))

    def _reduce(elem):
        if reduce_rows:
            # sublane-aligned partial reduce: pure VPU adds, no XLU
            return elem.reshape(row_tile // SUBLANES, SUBLANES, LANES).sum(axis=0)
        return elem  # tiny single-block case; accumulator matches full tile

    def kernel(true_ref, pred_ref, score_ref, out_ref, acc_ref):
        c = pl.program_id(0)   # megacore-parallel axis
        k = pl.program_id(1)   # sequential reduction axis

        @pl.when(k == 0)
        def _():
            acc_ref[...] = jnp.zeros_like(acc_ref)

        elem = _loss(true_ref, pred_ref, score_ref)

        if need_mask:
            row_block = c * inner + k                      # logical block index
            # Does this block extend past the valid rows (ragged tail or a
            # duplicated, index-clamped block)?  Scalar test -> interior
            # blocks skip the iota/select entirely.
            needs = (row_block + 1) * row_tile > rows

            @pl.when(needs)
            def _():
                r = lax.broadcasted_iota(jnp.int32, (row_tile, LANES), 0)
                gr = row_block * row_tile + r              # global row index
                # keep this a select (stale VMEM may hold NaN/Inf)
                acc_ref[...] += _reduce(jnp.where(gr < rows, elem, 0.0))

            @pl.when(jnp.logical_not(needs))
            def _():
                acc_ref[...] += _reduce(elem)
        else:
            acc_ref[...] += _reduce(elem)

        @pl.when(k == pl.num_programs(1) - 1)
        def _():
            out_ref[0, :, :] = acc_ref[...]

    return kernel


def bce_with_logits_weighted(true, pred, score, *, row_tile=2048):
    """Equivalent to torch.nn.BCEWithLogitsLoss(weight=score)(pred, true)."""
    assert pred.shape == true.shape == score.shape
    n_elem = int(pred.size)

    # Only pad (which costs a full-array copy) when the lane dimension is
    # ragged. When we do pad, go to a multiple of 8*128 so rows stay sublane
    # aligned -- the copy already happened, extra zeros are free and they
    # contribute exactly 0 to the loss (weight == 0 there).
    pad = 0 if n_elem % LANES == 0 else (-n_elem) % (SUBLANES * LANES)

    def _flat(a):
        a = jnp.reshape(a, (-1,))          # free reshape, native dtype kept
        if pad:
            a = jnp.pad(a, (0, pad))
        return jnp.reshape(a, (-1, LANES))

    t2, p2, s2 = _flat(true), _flat(pred), _flat(score)
    rows = t2.shape[0]

    # Tile size: as large as possible (amortize per-step pipeline overhead).
    # Do NOT raise above ~4096 rows without re-deriving VMEM: v5e scoped
    # default is 16 MiB, v7x scoped default is 32 MiB (64 MiB physical).
    row_tile = max(SUBLANES, int(row_tile))
    if rows <= row_tile:
        row_tile = rows                         # single full-array block
    else:
        row_tile = (row_tile // SUBLANES) * SUBLANES
    grid_rows = pl.cdiv(rows, row_tile)

    # Split the reduction across 2 TensorCores (v7x megacore) only when there
    # is enough work to amortise a possibly duplicated tail block; on
    # single-TC v5e/v6e this is just a 2-level loop.
    n_par = 2 if grid_rows >= 4 else 1
    inner = pl.cdiv(grid_rows, n_par)

    # Mask only needed if logical blocks cover more rows than actually exist
    # (ragged final block and/or duplicated clamped blocks).
    need_mask = (n_par * inner * row_tile) != rows

    # Accumulator rows: (8,128) when the per-step sublane reduce applies,
    # else (row_tile,128) for the tiny single-block corner case.
    acc_rows = SUBLANES if row_tile % SUBLANES == 0 else row_tile

    def in_map(c, k):
        # Clamp so duplicated tail blocks re-read valid data (masked to 0).
        return (jnp.minimum(c * inner + k, grid_rows - 1), 0)

    kernel = _make_bce_kernel(row_tile, inner, rows, need_mask)

    bytes_in = n_elem * (jnp.dtype(true.dtype).itemsize
                         + jnp.dtype(pred.dtype).itemsize
                         + jnp.dtype(score.dtype).itemsize)
    cost = pl.CostEstimate(flops=7 * n_elem,
                           transcendentals=2 * n_elem,
                           bytes_accessed=bytes_in)

    partial = pl.pallas_call(
        kernel,
        out_shape=jax.ShapeDtypeStruct((n_par, acc_rows, LANES), jnp.float32),
        grid_spec=pltpu.PrefetchScalarGridSpec(
            num_scalar_prefetch=0,
            grid=(n_par, inner),
            in_specs=[
                pl.BlockSpec((row_tile, LANES), in_map),
                pl.BlockSpec((row_tile, LANES), in_map),
                pl.BlockSpec((row_tile, LANES), in_map),
            ],
            out_specs=pl.BlockSpec((1, acc_rows, LANES), lambda c, k: (c, 0, 0)),
            scratch_shapes=[pltpu.VMEM((acc_rows, LANES), jnp.float32)],
        ),
        compiler_params=pltpu.CompilerParams(
            dimension_semantics=("parallel", "arbitrary")),
        cost_estimate=cost,
    )(t2, p2, s2)

    # Mean over ALL elements (PyTorch default reduction='mean').
    return jnp.sum(partial) / n_elem


def _reference(true, pred, score):
    x = pred.astype(jnp.float32)
    y = true.astype(jnp.float32)
    w = score.astype(jnp.float32)
    elem = w * (jnp.maximum(x, 0.0) - x * y + jnp.log1p(jnp.exp(-jnp.abs(x))))
    return jnp.sum(elem) / pred.size


def _check(shape, key, **kw):
    k1, k2, k3 = jax.random.split(key, 3)
    pred = jax.random.normal(k1, shape, dtype=jnp.float32)                 # logits
    true = (jax.random.uniform(k2, shape) > 0.5).astype(jnp.float32)       # targets
    score = jax.random.uniform(k3, shape, dtype=jnp.float32)               # weights
    loss = bce_with_logits_weighted(true, pred, score, **kw)
    jax.block_until_ready(loss)
    ref = _reference(true, pred, score)
    assert jnp.allclose(loss, ref, rtol=1e-5, atol=1e-6), (shape, loss, ref)
    return loss


if __name__ == "__main__":
    key = jax.random.PRNGKey(0)
    k0, k1, k2, k3, k4 = jax.random.split(key, 5)

    # main case: NCHW as the PyTorch training loop feeds (single block, no pad)
    _check((2, 4, 16, 16), k0)
    # lane-ragged size (exercises the pad-only-when-needed path)
    _check((3, 5, 7, 11), k1)
    # lane-aligned, rows not a multiple of row_tile: ragged last block + gated mask
    _check((2, 3, 16, 32), k2, row_tile=16)
    # multi-block, 2-way parallel split with odd block count (dedup + mask path)
    _check((2, 5, 16, 32), k3, row_tile=8)
    # tiny single-block case with rows < 8 (full-dim block, no sublane reduce)
    _check((2, 2, 128), k4)

    print("KERNEL_OK")
</pallas_src>

<mosaic_0001>
module attributes {stable_mosaic.version = 11 : i64} {
  func.func @kernel(%arg0: i32, %arg1: i32, %arg2: memref<16x128xf32, #tpu.memory_space<vmem>>, %arg3: memref<16x128xf32, #tpu.memory_space<vmem>>, %arg4: memref<16x128xf32, #tpu.memory_space<vmem>>, %arg5: memref<1x8x128xf32, #tpu.memory_space<vmem>>, %arg6: memref<8x128xf32, #tpu.memory_space<vmem>>) attributes {dimension_semantics = [#tpu.dimension_semantics<parallel>, #tpu.dimension_semantics<arbitrary>], iteration_bounds = array<i64: 1, 1>, scalar_prefetch = 0 : i64, scratch_operands = 1 : i64, tpu.core_type = #tpu.core_type<tc>, window_params = [{transform_indices = @transform_0, window_bounds = array<i64: 16, 128>}, {transform_indices = @transform_1, window_bounds = array<i64: 16, 128>}, {transform_indices = @transform_2, window_bounds = array<i64: 16, 128>}, {transform_indices = @transform_3, window_bounds = array<i64: 1, 8, 128>}]} {
    %c0_i32 = arith.constant 0 : i32
    %0 = arith.cmpi eq, %arg1, %c0_i32 : i32
    %1 = arith.extui %0 : i1 to i32
    %c0_i32_0 = arith.constant 0 : i32
    %2 = arith.cmpi ne, %1, %c0_i32_0 : i32
    scf.if %2 {
      %cst_14 = arith.constant 0.000000e+00 : f32
      %25 = vector.broadcast %cst_14 : f32 to vector<8x128xf32>
      %c0_15 = arith.constant 0 : index
      %c0_16 = arith.constant 0 : index
      %26 = vector.load %arg6[%c0_15, %c0_16] : memref<8x128xf32, #tpu.memory_space<vmem>>, vector<8x128xf32>
      tpu.vector_store %arg6[%c0_15, %c0_16], %25 {strides = array<i32>} : memref<8x128xf32, #tpu.memory_space<vmem>>, vector<8x128xf32>,
    } else {
    }
    %c0 = arith.constant 0 : index
    %c0_1 = arith.constant 0 : index
    %3 = vector.load %arg3[%c0, %c0_1] : memref<16x128xf32, #tpu.memory_space<vmem>>, vector<16x128xf32>
    %c0_2 = arith.constant 0 : index
    %c0_3 = arith.constant 0 : index
    %4 = vector.load %arg2[%c0_2, %c0_3] : memref<16x128xf32, #tpu.memory_space<vmem>>, vector<16x128xf32>
    %c0_4 = arith.constant 0 : index
    %c0_5 = arith.constant 0 : index
    %5 = vector.load %arg4[%c0_4, %c0_5] : memref<16x128xf32, #tpu.memory_space<vmem>>, vector<16x128xf32>
    %cst = arith.constant 0.000000e+00 : f32
    %6 = vector.broadcast %cst : f32 to vector<16x128xf32>
    %7 = arith.maximumf %3, %6 : vector<16x128xf32>
    %8 = arith.mulf %3, %4 : vector<16x128xf32>
    %9 = arith.subf %7, %8 : vector<16x128xf32>
    %10 = math.absf %3 : vector<16x128xf32>
    %cst_6 = arith.constant 0.000000e+00 : f32
    %11 = vector.broadcast %cst_6 : f32 to vector<16x128xf32>
    %12 = arith.subf %11, %10 : vector<16x128xf32>
    %13 = math.exp %12 : vector<16x128xf32>
    %14 = math.log1p %13 : vector<16x128xf32>
    %15 = arith.addf %9, %14 : vector<16x128xf32>
    %16 = arith.mulf %5, %15 : vector<16x128xf32>
    %c0_7 = arith.constant 0 : index
    %c0_8 = arith.constant 0 : index
    %17 = vector.load %arg6[%c0_7, %c0_8] : memref<8x128xf32, #tpu.memory_space<vmem>>, vector<8x128xf32>
    %18 = vector.shape_cast %16 : vector<16x128xf32> to vector<2x8x128xf32>
    %cst_9 = arith.constant dense<0.000000e+00> : vector<8x128xf32>
    %19 = vector.multi_reduction <add>, %18, %cst_9 [0] : vector<2x8x128xf32> to vector<8x128xf32>
    %20 = arith.addf %17, %19 : vector<8x128xf32>
    %c0_10 = arith.constant 0 : index
    %c0_11 = arith.constant 0 : index
    %21 = vector.load %arg6[%c0_10, %c0_11] : memref<8x128xf32, #tpu.memory_space<vmem>>, vector<8x128xf32>
    tpu.vector_store %arg6[%c0_10, %c0_11], %20 {strides = array<i32>} : memref<8x128xf32, #tpu.memory_space<vmem>>, vector<8x128xf32>,
    %c0_i32_12 = arith.constant 0 : i32
    %22 = arith.cmpi eq, %arg1, %c0_i32_12 : i32
    %23 = arith.extui %22 : i1 to i32
    %c0_i32_13 = arith.constant 0 : i32
    %24 = arith.cmpi ne, %23, %c0_i32_13 : i32
    scf.if %24 {
      %c0_14 = arith.constant 0 : index
      %c0_15 = arith.constant 0 : index
      %25 = vector.load %arg6[%c0_14, %c0_15] : memref<8x128xf32, #tpu.memory_space<vmem>>, vector<8x128xf32>
      %c0_16 = arith.constant 0 : index
      %c0_17 = arith.constant 0 : index
      %c0_18 = arith.constant 0 : index
      %26 = vector.load %arg5[%c0_16, %c0_17, %c0_18] : memref<1x8x128xf32, #tpu.memory_space<vmem>>, vector<1x8x128xf32>
      %27 = vector.shape_cast %26 : vector<1x8x128xf32> to vector<8x128xf32>
      %28 = vector.shape_cast %25 : vector<8x128xf32> to vector<1x8x128xf32>
      tpu.vector_store %arg5[%c0_16, %c0_17, %c0_18], %28 {strides = array<i32>} : memref<1x8x128xf32, #tpu.memory_space<vmem>>, vector<1x8x128xf32>,
    } else {
    }
    return
  }
  func.func @transform_0(%arg0: i32, %arg1: i32) -> (i32, i32) {
    %c1_i32 = arith.constant 1 : i32
    %0 = arith.muli %arg0, %c1_i32 : i32
    %1 = arith.addi %0, %arg1 : i32
    %c0_i32 = arith.constant 0 : i32
    %2 = arith.minsi %1, %c0_i32 : i32
    %c0_i32_0 = arith.constant 0 : i32
    %c0_i32_1 = arith.constant 0 : i32
    return %2, %c0_i32_0 : i32, i32
  }
  func.func @transform_1(%arg0: i32, %arg1: i32) -> (i32, i32) {
    %c1_i32 = arith.constant 1 : i32
    %0 = arith.muli %arg0, %c1_i32 : i32
    %1 = arith.addi %0, %arg1 : i32
    %c0_i32 = arith.constant 0 : i32
    %2 = arith.minsi %1, %c0_i32 : i32
    %c0_i32_0 = arith.constant 0 : i32
    %c0_i32_1 = arith.constant 0 : i32
    return %2, %c0_i32_0 : i32, i32
  }
  func.func @transform_2(%arg0: i32, %arg1: i32) -> (i32, i32) {
    %c1_i32 = arith.constant 1 : i32
    %0 = arith.muli %arg0, %c1_i32 : i32
    %1 = arith.addi %0, %arg1 : i32
    %c0_i32 = arith.constant 0 : i32
    %2 = arith.minsi %1, %c0_i32 : i32
    %c0_i32_0 = arith.constant 0 : i32
    %c0_i32_1 = arith.constant 0 : i32
    return %2, %c0_i32_0 : i32, i32
  }
  func.func @transform_3(%arg0: i32, %arg1: i32) -> (i32, i32, i32) {
    %c0_i32 = arith.constant 0 : i32
    %c0_i32_0 = arith.constant 0 : i32
    %c0_i32_1 = arith.constant 0 : i32
    return %arg0, %c0_i32, %c0_i32_0 : i32, i32, i32
  }
}

</mosaic_0001>

<bundles_post_ra>
// kernel: tpu_custom_call.1
= control target key start
LH: loop header
LB: loop body
LE: loop exit
PB: predicated region body
PF: predicated region fallthrough
CT: control target
= control target key end

     0   :  { %8 = vsyncpa [#allocation4], 0  ;;  %s362_s0 = inlined_call_operand.hbm [shape: f32[16,128], index: 0, kind: input, shape index: {}]   ;;  %s363_s1 = inlined_call_operand.hbm [shape: f32[16,128], index: 1, kind: input, shape index: {}]   ;;  %s364_s2 = inlined_call_operand.hbm [shape: f32[16,128], index: 2, kind: input, shape index: {}]   ;;  %s365_s3 = inlined_call_operand.hbm [shape: f32[1,8,128], index: 3, kind: output, shape index: {}]  }
   0x1   :  { %9 = vsyncpa [#allocation7], 0 }
   0x2   :  { %10 = vsyncpa [#allocation5], 0  ;;  %s272_s12 = smov [#allocation6]   ;;  %s273_s14 = smov [#allocation3]  }
   0x3   :  { %s40_s13 = sshll.u32 %s272_s12, 4  ;;  %s22_s15 = sshll.u32 %s273_s14, 4  ;;  %s41_s13 = int_to_ptr.vmem [resolvable:$true] %s40_s13  ;;  %s298_s15 = int_to_ptr.vmem [resolvable:$true] %s22_s15 }
   0x4   :  { %s178_s18 = scalar_lea.hbm %s363_s1, 256 }
   0x5   :  { %p179_p0 = scmp.ne.s32.totalorder %s363_s1, %s178_s18  ;;  %p182_p1 = scmp.lt.u32.totalorder %s178_s18, %s363_s1 }
   0x7   :  { %p184_p2 = pnand %p182_p1, %p179_p0 }
   0x9   :  { %187 = shalt.err (!%p184_p2)
}
   0xa   :  { %s188_s23 = scalar_lea.vmem %s41_s13, 256  ;;  %p193_p4 = scmp.lt.s32.totalorder %s41_s13, %s41_s13 }
   0xb   :  { %p189_p3 = scmp.ne.s32.totalorder %s41_s13, %s188_s23  ;;  %p194_p5 = scmp.lt.s32.totalorder %s188_s23, %s188_s23 }
   0xd   :  { %p195_p6 = por %p194_p5, %p193_p4 }
   0xf   :  { %p196_p7 = pnand %p195_p6, %p189_p3 }
  0x11   :  { %199 = shalt.err (!%p196_p7)
}
  0x12   :  { %s274_s24 = smov 128   ;;  %s275_s25 = smov 8  }
  0x13   :  { %46 = dma.hbm_to_vmem [thread:$0]  %s363_s1, 256, %s41_s13, [#allocation7], %s274_s24, %s274_s24, %s275_s25  }
  0x14   :  { %s200_s30 = scalar_lea.hbm %s362_s0, 256 }
  0x15   :  { %p201_p8 = scmp.ne.s32.totalorder %s362_s0, %s200_s30  ;;  %p204_p9 = scmp.lt.u32.totalorder %s200_s30, %s362_s0 }
  0x17   :  { %p206_p10 = pnand %p204_p9, %p201_p8 }
  0x19   :  { %209 = shalt.err (!%p206_p10)
}
  0x1a   :  { %s210_s8 = scalar_lea.vmem %s298_s15, 256  ;;  %p215_p12 = scmp.lt.s32.totalorder %s298_s15, %s298_s15 }
  0x1b   :  { %p211_p11 = scmp.ne.s32.totalorder %s298_s15, %s210_s8  ;;  %p216_p13 = scmp.lt.s32.totalorder %s210_s8, %s210_s8 }
  0x1d   :  { %p217_p0 = por %p216_p13, %p215_p12 }
  0x1f   :  { %p218_p1 = pnand %p217_p0, %p211_p11 }
  0x21   :  { %221 = shalt.err (!%p218_p1)
}
  0x22   :  { %28 = dma.hbm_to_vmem [thread:$0]  %s362_s0, 256, %s298_s15, [#allocation4], %s274_s24, %s274_s24, %s275_s25  }
  0x23   :  { %s276_s10 = smov [#allocation8]   ;;  %s222_s14 = scalar_lea.hbm %s364_s2, 256 }
  0x24   :  { %s58_s11 = sshll.u32 %s276_s10, 4  ;;  %p223_p2 = scmp.ne.s32.totalorder %s364_s2, %s222_s14  ;;  %s59_s11 = int_to_ptr.vmem [resolvable:$true] %s58_s11 }
  0x25   :  { %p226_p3 = scmp.lt.u32.totalorder %s222_s14, %s364_s2 }
  0x27   :  { %p228_p4 = pnand %p226_p3, %p223_p2 }
  0x29   :  { %231 = shalt.err (!%p228_p4)
}
  0x2a   :  { %s232_s20 = scalar_lea.vmem %s59_s11, 256  ;;  %p237_p6 = scmp.lt.s32.totalorder %s59_s11, %s59_s11 }
  0x2b   :  { %p233_p5 = scmp.ne.s32.totalorder %s59_s11, %s232_s20  ;;  %p238_p7 = scmp.lt.s32.totalorder %s232_s20, %s232_s20 }
  0x2d   :  { %p239_p8 = por %p238_p7, %p237_p6 }
  0x2f   :  { %p240_p9 = pnand %p239_p8, %p233_p5 }
  0x31   :  { %243 = shalt.err (!%p240_p9)
}
  0x32   :  { %64 = dma.hbm_to_vmem [thread:$0]  %s364_s2, 256, %s59_s11, [#allocation7], %s274_s24, %s274_s24, %s275_s25  }
  0x33   :  { %266 = dma.done.wait [#allocation4], 256  }
  0x34   :  { %267 = vsyncadd [#allocation4], 4294967040 }
  0x35   :  { %268 = dma.done.wait [#allocation7], 512  }
  0x36   :  { %269 = vsyncadd [#allocation7], 4294966784  ;;  %v91_v0 = vld [vmem:[#allocation6] sm:$0xff]  ;;  %v92_v1 = vld [vmem:[#allocation6 + $0x8] sm:$0xff]  ;;  %s277_s2 = smov [#allocation9]  }
  0x37   :  { %v103_v2 = vand.u32 2147483647, %v91_v0  ;;  %v104_v3 = vand.u32 2147483647, %v92_v1  ;;  %v93_v14 = vld [vmem:[#allocation3] sm:$0xff]  ;;  %v94_v15 = vld [vmem:[#allocation3 + $0x8] sm:$0xff] }
  0x38   :  { %v97_v17 = vmax.f32 %v91_v0, 0.0  ;;  %v99_v18 = vmul.f32 %v93_v14, %v91_v0  ;;  %v98_v21 = vmax.f32 %v92_v1, 0.0  ;;  %v100_v22 = vmul.f32 %v94_v15, %v92_v1  ;;  %v95_v32 = vld [vmem:[#allocation8] sm:$0xff]  ;;  %v96_v34 = vld [vmem:[#allocation8 + $0x8] sm:$0xff]  ;;  %s148_s21 = sshll.u32 %s277_s2, 4  ;;  %s149_s21 = int_to_ptr.vmem [resolvable:$true] %s148_s21 }
  0x39   :  { %v105_v4 = vsub.f32 0.0, %v103_v2  ;;  %v106_v5 = vsub.f32 0.0, %v104_v3  ;;  %s244_s22 = scalar_lea.vmem %s149_s21, 128  ;;  %p249_p11 = scmp.lt.s32.totalorder %s149_s21, %s149_s21 }
  0x3a   :  { %v101_v26 = vsub.f32 %v97_v17, %v99_v18  ;;  %v102_v29 = vsub.f32 %v98_v21, %v100_v22  ;;  %p245_p10 = scmp.ne.s32.totalorder %s149_s21, %s244_s22  ;;  %p250_p12 = scmp.lt.s32.totalorder %s244_s22, %s244_s22 }
  0x3b   :  { %v107_v6 = vmul.f32 1.442695, %v105_v4  ;;  %v109_v7 = vmul.f32 1.442695, %v106_v5 }
  0x3c   :  { %p251_p13 = por %p250_p12, %p249_p11 }
  0x3d   :  { %170 = vpow2.f32 %v107_v6 }
  0x3e   :  { %172 = vpow2.f32 %v109_v7  ;;  %p252_p0 = pnand %p251_p13, %p245_p10 }
  0x47   :  { %v171_v8 = vpop.eup %170 }
  0x48   :  { %v173_v9 = vpop.eup %172  ;;  %v111_v10 = vadd.f32 1.0, %v171_v8  ;;  %v114_v12 = vmul.f32 -0.5, %v171_v8  ;;  %v117_v19 = vand.u32 2147483647, %v171_v8 }
  0x49   :  { %v120_v11 = vadd.f32 1.0, %v173_v9  ;;  %v123_v13 = vmul.f32 -0.5, %v173_v9  ;;  %v126_v23 = vand.u32 2147483647, %v173_v9 }
  0x4a   :  { %174 = vlog2.f32 %v111_v10  ;;  %v115_v16 = vadd.f32 1.0, %v114_v12  ;;  %vm118_vm0 = vcmp.lt.f32.partialorder %v117_v19, 0.0004427343 }
  0x4b   :  { %176 = vlog2.f32 %v120_v11  ;;  %v124_v20 = vadd.f32 1.0, %v123_v13  ;;  %vm127_vm1 = vcmp.lt.f32.partialorder %v126_v23, 0.0004427343 }
  0x4c   :  { %v116_v24 = vmul.f32 %v171_v8, %v115_v16 }
  0x4d   :  { %v125_v27 = vmul.f32 %v173_v9, %v124_v20 }
  0x54   :  { %v175_v25 = vpop.eup %174 }
  0x55   :  { %v177_v28 = vpop.eup %176  ;;  %v113_v30 = vmul.f32 0.6931472, %v175_v25 }
  0x56   :  { %v122_v31 = vmul.f32 0.6931472, %v177_v28 }
  0x57   :  { %v119_v33 = vsel %vm118_vm0, %v116_v24, %v113_v30 }
  0x58   :  { %v128_v35 = vsel %vm127_vm1, %v125_v27, %v122_v31  ;;  %v129_v36 = vadd.f32 %v119_v33, %v101_v26 }
  0x59   :  { %v130_v37 = vadd.f32 %v128_v35, %v102_v29 }
  0x5a   :  { %v131_v38 = vmul.f32 %v129_v36, %v95_v32 }
  0x5b   :  { %v132_v39 = vmul.f32 %v130_v37, %v96_v34 }
  0x5d   :  { %v134_v40 = vadd.f32 %v132_v39, %v131_v38 }
  0x5f   :  { %141 = vst [vmem:[#allocation9] sm:$0xff] %v134_v40 }
  0x60   :  { %255 = shalt.err (!%p252_p0)
}
  0x61   :  { %s256_s25 = scalar_lea.hbm %s365_s3, 128 }
  0x62   :  { %p257_p1 = scmp.ne.s32.totalorder %s365_s3, %s256_s25  ;;  %p260_p2 = scmp.lt.u32.totalorder %s256_s25, %s365_s3 }
  0x64   :  { %p262_p3 = pnand %p260_p2, %p257_p1 }
  0x66   :  { %265 = shalt.err (!%p262_p3)
}
  0x67   :  { %151 = dma.vmem_to_hbm [thread:$0]  %s149_s21, 128, %s365_s3, [#allocation5]  }
  0x68   :  { %270 = dma.done.wait [#allocation5], 128  }
  0x69   :  { %271 = vsyncadd [#allocation5], 4294967168 }
  0x6a   :  { %155 = vsyncpa [#allocation4], 1 }
  0x6b   :  { %156 = vsyncpa [#allocation7], 1 }
  0x6c   :  { %157 = vsyncpa [#allocation5], 1 }

</bundles_post_ra>
